<compile_context>
chip_gen: v7x
topology: tpu7x:2x2x1
jax: 0.10.0
libtpu: 0.0.40
codegen_flags: <defaults>
</compile_context>

<pallas_src>
import jax
import jax.numpy as jnp
from jax.experimental import pallas as pl
from jax.experimental.pallas import tpu as pltpu


def _choose_batch_tile(B, max_bt=8):
    """Largest divisor of B that is <= max_bt while leaving >=2 batch programs
    (keeps both v7x TensorCores busy for B >= 2)."""
    if B <= 1:
        return 1
    best = 1
    for bt in range(1, min(max_bt, B) + 1):
        if B % bt == 0 and B // bt >= 2:
            best = bt
    return best


def _choose_spatial_tile(HW, C, Bt, itemsize, budget_bytes):
    """Return (THW, nk, has_tail).

    If the whole image fits the budget, use a full-extent block (no masking,
    no padding).  Otherwise pick a large multiple-of-128 tile and mask only
    the partial trailing tile."""
    row_bytes = Bt * C * itemsize          # bytes per spatial position
    if HW * row_bytes <= budget_bytes:
        return HW, 1, False                # full-extent last dim
    lanes = max(128, (budget_bytes // (row_bytes * 128)) * 128)
    if lanes >= HW:                        # degenerate corner: just take it all
        return HW, 1, False
    nk = (HW + lanes - 1) // lanes
    has_tail = (HW % lanes) != 0
    return lanes, nk, has_tail


def _make_channel_attention_kernel(Bt, HW, THW, nk, has_tail):
    tail_len = HW - (nk - 1) * THW         # valid lanes in the last tile

    def kernel(x_ref, w1_ref, w2t_ref, out_ref, sum_ref, max_ref):
        # x_ref  : (Bt, C, THW)   spatial tile of Bt batch elements
        # w1_ref : (Cr, C)        fc1 weight, natural orientation (C on lanes)
        # w2t_ref: (Cr, C)        fc2 weight, pre-transposed      (C on lanes)
        # out_ref: (1, Bt, C)
        # sum_ref/max_ref: (Bt, C) f32 running accumulators (VMEM scratch)
        k = pl.program_id(1)

        @pl.when(k == 0)
        def _init():
            sum_ref[...] = jnp.zeros_like(sum_ref)
            max_ref[...] = jnp.full_like(max_ref, -jnp.inf)

        def accumulate(x_sum_f32, x_max):
            sum_ref[...] += jnp.sum(x_sum_f32, axis=2)                       # (Bt, C)
            max_ref[...] = jnp.maximum(
                max_ref[...], jnp.max(x_max, axis=2).astype(jnp.float32))    # (Bt, C)

        if has_tail:
            # Mask only the tile that contains the ragged boundary; all other
            # tiles take the mask-free path.
            @pl.when(k < nk - 1)
            def _full_tile():
                x = x_ref[...]
                accumulate(x.astype(jnp.float32), x)

            @pl.when(k == nk - 1)
            def _tail_tile():
                x = x_ref[...]
                col = jax.lax.broadcasted_iota(jnp.int32, x.shape, 2)
                valid = col < tail_len
                accumulate(jnp.where(valid, x, 0).astype(jnp.float32),
                           jnp.where(valid, x, -jnp.inf))
        else:
            x = x_ref[...]
            accumulate(x.astype(jnp.float32), x)

        @pl.when(k == nk - 1)
        def _finalize():
            avg = sum_ref[...] * (1.0 / HW)                                  # (Bt, C)
            pooled = jnp.concatenate([avg, max_ref[...]], axis=0)            # (2Bt, C)
            w1 = w1_ref[...].astype(jnp.float32)                             # (Cr, C)
            w2t = w2t_ref[...].astype(jnp.float32)                           # (Cr, C)
            # fc1: contract over C (both operands lane-dense in C).
            h = jax.lax.dot_general(
                pooled, w1, (((1,), (1,)), ((), ())),
                preferred_element_type=jnp.float32)                          # (2Bt, Cr)
            h = jnp.maximum(h, 0.0)
            # fc2 is bias-free and linear: add the relu'd branches first.
            h2 = h[:Bt] + h[Bt:]                                             # (Bt, Cr)
            y = jnp.dot(h2, w2t, preferred_element_type=jnp.float32)         # (Bt, C)
            out_ref[0] = jax.nn.sigmoid(y).astype(out_ref.dtype)

    return kernel


def channel_attention(x, w1, w2, *, tile_budget_bytes=8 << 20,
                      vmem_limit_bytes=40 << 20):
    """x: (B, C, H, W) NCHW; w1: (C//r, C, 1, 1); w2: (C, C//r, 1, 1).
    Returns sigmoid channel-attention weights of shape (B, C, 1, 1)."""
    B, C, H, W = x.shape
    Cr = w1.shape[0]
    HW = H * W

    w1m = w1.reshape(Cr, C)            # fc1, natural (Cr, C)
    w2t = w2.reshape(C, Cr).T          # fc2, pre-transposed -> (Cr, C)

    Bt = _choose_batch_tile(B)
    nb = B // Bt

    THW, nk, has_tail = _choose_spatial_tile(HW, C, Bt, x.dtype.itemsize,
                                             tile_budget_bytes)

    x_flat = x.reshape(B, C, HW)       # free reshape; no host-side padding

    kernel = _make_channel_attention_kernel(Bt, HW, THW, nk, has_tail)

    cost = pl.CostEstimate(
        flops=2 * B * C * HW + 8 * B * C * Cr,
        transcendentals=B * C,
        bytes_accessed=(B * C * HW + B * C) * x.dtype.itemsize
                       + 2 * C * Cr * w1.dtype.itemsize,
    )

    out = pl.pallas_call(
        kernel,
        out_shape=jax.ShapeDtypeStruct((nb, Bt, C), x.dtype),
        grid_spec=pltpu.PrefetchScalarGridSpec(
            num_scalar_prefetch=0,
            grid=(nb, nk),
            in_specs=[
                pl.BlockSpec((Bt, C, THW), lambda b, k: (b, 0, k)),
                pl.BlockSpec((Cr, C), lambda b, k: (0, 0)),
                pl.BlockSpec((Cr, C), lambda b, k: (0, 0)),
            ],
            out_specs=pl.BlockSpec((1, Bt, C), lambda b, k: (b, 0, 0)),
            scratch_shapes=[
                pltpu.VMEM((Bt, C), jnp.float32),   # running sum
                pltpu.VMEM((Bt, C), jnp.float32),   # running max
            ],
        ),
        compiler_params=pltpu.CompilerParams(
            dimension_semantics=("parallel", "arbitrary"),
            vmem_limit_bytes=vmem_limit_bytes),
        cost_estimate=cost,
    )(x_flat, w1m, w2t)

    return out.reshape(B, C, 1, 1)


def channel_attention_ref(x, w1, w2):
    B, C, H, W = x.shape
    Cr = w1.shape[0]
    w1m = w1.reshape(Cr, C)
    w2m = w2.reshape(C, Cr)
    avg = jnp.mean(x, axis=(2, 3))                       # (B, C)
    mx = jnp.max(x, axis=(2, 3))                         # (B, C)
    a = jnp.maximum(avg @ w1m.T, 0.0) @ w2m.T
    m = jnp.maximum(mx @ w1m.T, 0.0) @ w2m.T
    return jax.nn.sigmoid(a + m).reshape(B, C, 1, 1)


if __name__ == "__main__":
    ratio = 8

    # Test 1: module defaults (channel=32, ratio=8), small HW -> full-extent
    # spatial block, no masking, two programs on the parallel batch axis.
    key = jax.random.PRNGKey(0)
    B, C, H, W = 2, 32, 16, 16
    Cr = C // ratio
    kx, k1, k2 = jax.random.split(key, 3)
    x = jax.random.normal(kx, (B, C, H, W), dtype=jnp.float32)
    w1 = jax.random.normal(k1, (Cr, C, 1, 1), dtype=jnp.float32) * 0.1
    w2 = jax.random.normal(k2, (C, Cr, 1, 1), dtype=jnp.float32) * 0.1

    out = jax.block_until_ready(channel_attention(x, w1, w2))
    ref = channel_attention_ref(x, w1, w2)
    assert out.shape == (B, C, 1, 1)
    assert jnp.allclose(out, ref, atol=1e-5, rtol=1e-5)

    # Test 2: ragged spatial size (HW=100) -> full-extent block == 100 lanes,
    # no host padding, no masking.
    B2, C2, H2, W2 = 3, 16, 10, 10
    Cr2 = C2 // ratio
    kx2, k12, k22 = jax.random.split(jax.random.PRNGKey(1), 3)
    x2 = jax.random.normal(kx2, (B2, C2, H2, W2), dtype=jnp.float32)
    w12 = jax.random.normal(k12, (Cr2, C2, 1, 1), dtype=jnp.float32) * 0.1
    w22 = jax.random.normal(k22, (C2, Cr2, 1, 1), dtype=jnp.float32) * 0.1
    out2 = jax.block_until_ready(channel_attention(x2, w12, w22))
    ref2 = channel_attention_ref(x2, w12, w22)
    assert jnp.allclose(out2, ref2, atol=1e-5, rtol=1e-5)

    # Test 3: tiny tile budget forces multi-tile streaming with a partial
    # trailing tile (HW=400 -> THW=128, nk=4, tail=16) and two batch blocks
    # (B=4 -> Bt=2), exercising the mask-only-the-boundary-tile path.
    B3, C3, H3, W3 = 4, 16, 20, 20
    Cr3 = C3 // ratio
    kx3, k13, k23 = jax.random.split(jax.random.PRNGKey(2), 3)
    x3 = jax.random.normal(kx3, (B3, C3, H3, W3), dtype=jnp.float32)
    w13 = jax.random.normal(k13, (Cr3, C3, 1, 1), dtype=jnp.float32) * 0.1
    w23 = jax.random.normal(k23, (C3, Cr3, 1, 1), dtype=jnp.float32) * 0.1
    out3 = jax.block_until_ready(
        channel_attention(x3, w13, w23, tile_budget_bytes=8 * 1024))
    ref3 = channel_attention_ref(x3, w13, w23)
    assert jnp.allclose(out3, ref3, atol=1e-5, rtol=1e-5)

    print("KERNEL_OK")
</pallas_src>

<mosaic_0001>
module attributes {stable_mosaic.version = 11 : i64} {
  func.func @kernel(%arg0: i32, %arg1: i32, %arg2: memref<1x32x256xf32, #tpu.memory_space<vmem>>, %arg3: memref<4x32xf32, #tpu.memory_space<vmem>>, %arg4: memref<4x32xf32, #tpu.memory_space<vmem>>, %arg5: memref<1x1x32xf32, #tpu.memory_space<vmem>>, %arg6: memref<1x32xf32, #tpu.memory_space<vmem>>, %arg7: memref<1x32xf32, #tpu.memory_space<vmem>>) attributes {dimension_semantics = [#tpu.dimension_semantics<parallel>, #tpu.dimension_semantics<arbitrary>], iteration_bounds = array<i64: 2, 1>, scalar_prefetch = 0 : i64, scratch_operands = 2 : i64, tpu.core_type = #tpu.core_type<tc>, window_params = [{transform_indices = @transform_0, window_bounds = array<i64: 1, 32, 256>}, {pipeline_mode = #tpu.pipeline_mode<synchronous>, transform_indices = @transform_1, window_bounds = array<i64: 4, 32>}, {pipeline_mode = #tpu.pipeline_mode<synchronous>, transform_indices = @transform_2, window_bounds = array<i64: 4, 32>}, {transform_indices = @transform_3, window_bounds = array<i64: 1, 1, 32>}]} {
    %c0_i32 = arith.constant 0 : i32
    %0 = arith.cmpi eq, %arg1, %c0_i32 : i32
    %1 = arith.extui %0 : i1 to i32
    %c0_i32_0 = arith.constant 0 : i32
    %2 = arith.cmpi ne, %1, %c0_i32_0 : i32
    scf.if %2 {
      %cst_14 = arith.constant 0.000000e+00 : f32
      %15 = vector.broadcast %cst_14 : f32 to vector<1x32xf32>
      %c0_15 = arith.constant 0 : index
      %c0_16 = arith.constant 0 : index
      %16 = vector.load %arg6[%c0_15, %c0_16] : memref<1x32xf32, #tpu.memory_space<vmem>>, vector<1x32xf32>
      tpu.vector_store %arg6[%c0_15, %c0_16], %15 {strides = array<i32>} : memref<1x32xf32, #tpu.memory_space<vmem>>, vector<1x32xf32>,
      %cst_17 = arith.constant 0xFF800000 : f32
      %17 = vector.broadcast %cst_17 : f32 to vector<1x32xf32>
      %c0_18 = arith.constant 0 : index
      %c0_19 = arith.constant 0 : index
      %18 = vector.load %arg7[%c0_18, %c0_19] : memref<1x32xf32, #tpu.memory_space<vmem>>, vector<1x32xf32>
      tpu.vector_store %arg7[%c0_18, %c0_19], %17 {strides = array<i32>} : memref<1x32xf32, #tpu.memory_space<vmem>>, vector<1x32xf32>,
    } else {
    }
    %c0 = arith.constant 0 : index
    %c0_1 = arith.constant 0 : index
    %c0_2 = arith.constant 0 : index
    %3 = vector.load %arg2[%c0, %c0_1, %c0_2] : memref<1x32x256xf32, #tpu.memory_space<vmem>>, vector<1x32x256xf32>
    %c0_3 = arith.constant 0 : index
    %c0_4 = arith.constant 0 : index
    %4 = vector.load %arg6[%c0_3, %c0_4] : memref<1x32xf32, #tpu.memory_space<vmem>>, vector<1x32xf32>
    %cst = arith.constant dense<0.000000e+00> : vector<1x32xf32>
    %5 = vector.multi_reduction <add>, %3, %cst [2] : vector<1x32x256xf32> to vector<1x32xf32>
    %6 = arith.addf %4, %5 : vector<1x32xf32>
    %c0_5 = arith.constant 0 : index
    %c0_6 = arith.constant 0 : index
    %7 = vector.load %arg6[%c0_5, %c0_6] : memref<1x32xf32, #tpu.memory_space<vmem>>, vector<1x32xf32>
    tpu.vector_store %arg6[%c0_5, %c0_6], %6 {strides = array<i32>} : memref<1x32xf32, #tpu.memory_space<vmem>>, vector<1x32xf32>,
    %c0_7 = arith.constant 0 : index
    %c0_8 = arith.constant 0 : index
    %8 = vector.load %arg7[%c0_7, %c0_8] : memref<1x32xf32, #tpu.memory_space<vmem>>, vector<1x32xf32>
    %cst_9 = arith.constant dense<0xFF800000> : vector<1x32xf32>
    %9 = vector.multi_reduction <maximumf>, %3, %cst_9 [2] : vector<1x32x256xf32> to vector<1x32xf32>
    %10 = arith.maximumf %8, %9 : vector<1x32xf32>
    %c0_10 = arith.constant 0 : index
    %c0_11 = arith.constant 0 : index
    %11 = vector.load %arg7[%c0_10, %c0_11] : memref<1x32xf32, #tpu.memory_space<vmem>>, vector<1x32xf32>
    tpu.vector_store %arg7[%c0_10, %c0_11], %10 {strides = array<i32>} : memref<1x32xf32, #tpu.memory_space<vmem>>, vector<1x32xf32>,
    %c0_i32_12 = arith.constant 0 : i32
    %12 = arith.cmpi eq, %arg1, %c0_i32_12 : i32
    %13 = arith.extui %12 : i1 to i32
    %c0_i32_13 = arith.constant 0 : i32
    %14 = arith.cmpi ne, %13, %c0_i32_13 : i32
    scf.if %14 {
      %c0_14 = arith.constant 0 : index
      %c0_15 = arith.constant 0 : index
      %15 = vector.load %arg6[%c0_14, %c0_15] : memref<1x32xf32, #tpu.memory_space<vmem>>, vector<1x32xf32>
      %cst_16 = arith.constant 3.906250e-03 : f32
      %16 = vector.broadcast %cst_16 : f32 to vector<1x32xf32>
      %17 = arith.mulf %15, %16 : vector<1x32xf32>
      %c0_17 = arith.constant 0 : index
      %c0_18 = arith.constant 0 : index
      %18 = vector.load %arg7[%c0_17, %c0_18] : memref<1x32xf32, #tpu.memory_space<vmem>>, vector<1x32xf32>
      %19 = tpu.concatenate %17, %18 in 0 : vector<1x32xf32>, vector<1x32xf32> -> vector<2x32xf32>
      %c0_19 = arith.constant 0 : index
      %c0_20 = arith.constant 0 : index
      %20 = vector.load %arg3[%c0_19, %c0_20] : memref<4x32xf32, #tpu.memory_space<vmem>>, vector<4x32xf32>
      %c0_21 = arith.constant 0 : index
      %c0_22 = arith.constant 0 : index
      %21 = vector.load %arg4[%c0_21, %c0_22] : memref<4x32xf32, #tpu.memory_space<vmem>>, vector<4x32xf32>
      %cst_23 = arith.constant dense<0.000000e+00> : vector<2x4xf32>
      %22 = tpu.matmul %19, %20, %cst_23 {dimension_numbers = #tpu.dot_dimension_numbers<[1], [1], [0], [0], [0, 0, 1, 0], [], []>} : vector<2x32xf32>, vector<4x32xf32>, vector<2x4xf32> -> vector<2x4xf32>
      %cst_24 = arith.constant 0.000000e+00 : f32
      %23 = vector.broadcast %cst_24 : f32 to vector<2x4xf32>
      %24 = arith.maximumf %22, %23 : vector<2x4xf32>
      %25 = vector.extract_strided_slice %24 {offsets = [0, 0], sizes = [1, 4], strides = [1, 1]} : vector<2x4xf32> to vector<1x4xf32>
      %26 = vector.extract_strided_slice %24 {offsets = [1, 0], sizes = [1, 4], strides = [1, 1]} : vector<2x4xf32> to vector<1x4xf32>
      %27 = arith.addf %25, %26 : vector<1x4xf32>
      %cst_25 = arith.constant dense<0.000000e+00> : vector<1x32xf32>
      %28 = tpu.matmul %27, %21, %cst_25 {dimension_numbers = #tpu.dot_dimension_numbers<[1], [0], [0], [1], [0, 0, 1, 1], [], []>} : vector<1x4xf32>, vector<4x32xf32>, vector<1x32xf32> -> vector<1x32xf32>
      %29 = arith.negf %28 : vector<1x32xf32>
      %30 = math.exp %29 : vector<1x32xf32>
      %cst_26 = arith.constant 1.000000e+00 : f32
      %31 = vector.broadcast %cst_26 : f32 to vector<1x32xf32>
      %32 = arith.addf %31, %30 : vector<1x32xf32>
      %33 = arith.divf %31, %32 : vector<1x32xf32>
      %c0_27 = arith.constant 0 : index
      %c0_28 = arith.constant 0 : index
      %c0_29 = arith.constant 0 : index
      %34 = vector.load %arg5[%c0_27, %c0_28, %c0_29] : memref<1x1x32xf32, #tpu.memory_space<vmem>>, vector<1x1x32xf32>
      %35 = vector.shape_cast %34 : vector<1x1x32xf32> to vector<1x32xf32>
      %36 = vector.shape_cast %33 : vector<1x32xf32> to vector<1x1x32xf32>
      tpu.vector_store %arg5[%c0_27, %c0_28, %c0_29], %36 {strides = array<i32>} : memref<1x1x32xf32, #tpu.memory_space<vmem>>, vector<1x1x32xf32>,
    } else {
    }
    return
  }
  func.func @transform_0(%arg0: i32, %arg1: i32) -> (i32, i32, i32) {
    %c0_i32 = arith.constant 0 : i32
    %c0_i32_0 = arith.constant 0 : i32
    return %arg0, %c0_i32, %arg1 : i32, i32, i32
  }
  func.func @transform_1(%arg0: i32, %arg1: i32) -> (i32, i32) {
    %c0_i32 = arith.constant 0 : i32
    %c0_i32_0 = arith.constant 0 : i32
    %c0_i32_1 = arith.constant 0 : i32
    return %c0_i32, %c0_i32_0 : i32, i32
  }
  func.func @transform_2(%arg0: i32, %arg1: i32) -> (i32, i32) {
    %c0_i32 = arith.constant 0 : i32
    %c0_i32_0 = arith.constant 0 : i32
    %c0_i32_1 = arith.constant 0 : i32
    return %c0_i32, %c0_i32_0 : i32, i32
  }
  func.func @transform_3(%arg0: i32, %arg1: i32) -> (i32, i32, i32) {
    %c0_i32 = arith.constant 0 : i32
    %c0_i32_0 = arith.constant 0 : i32
    %c0_i32_1 = arith.constant 0 : i32
    return %arg0, %c0_i32, %c0_i32_0 : i32, i32, i32
  }
}

</mosaic_0001>

<bundles_post_ra>
// kernel: tpu_custom_call.1
= control target key start
LH: loop header
LB: loop body
LE: loop exit
PB: predicated region body
PF: predicated region fallthrough
CT: control target
= control target key end

     0   :  { %8 = vsyncpa [#allocation5], 0  ;;  %s1987_s0 = inlined_call_operand.hbm [shape: f32[2,32,256], index: 0, kind: input, shape index: {}]   ;;  %s1988_s1 = inlined_call_operand.hbm [shape: f32[4,32], index: 1, kind: input, shape index: {}]   ;;  %s1989_s2 = inlined_call_operand.vmem [shape: f32[4,32], index: 2, kind: input, shape index: {}]   ;;  %s1990_s3 = inlined_call_operand.hbm [shape: f32[2,1,32], index: 3, kind: output, shape index: {}]  }
   0x1   :  { %10 = vsyncpa [#allocation5 + $0x1], 0 }
   0x2   :  { %11 = vsyncpa [#allocation8], 0 }
   0x3   :  { %12 = vsyncpa [#allocation6], 0 }
   0x4   :  { %14 = vsyncpa [#allocation6 + $0x1], 0  ;;  %s1600_s12 = smov 0   ;;  %s1602_s13 = smov 0  }
   0x5   :  { %s1604_s14 = smov 0   ;;  %s1606_s15 = smov 0  }
   0x6   :  { %s1608_s16 = smov 0   ;;  %s1610_s17 = smov 0  }
   0x7 LB: > { %s1303_s18 = sadd.s32 4294967295, %s1568_s17   ;;  %s1304_s19 = sadd.s32 4294967294, %s1568_s17   ;;  %s1568_s17 = sphi %s1610_s17, %s20_s17   ;;  %s1564_s16 = sphi %s1608_s16, %s2018_s16   ;;  %s1560_s15 = sphi %s1606_s15, %s2017_s15   ;;  %s1556_s14 = sphi %s1604_s14, %s2016_s14   ;;  %s1552_s13 = sphi %s1602_s13, %s2015_s13   ;;  %s1548_s12 = sphi %s1600_s12, %s2014_s12  }
   0x8   : > { %s41_s20 = sadd.s32 1, %s1556_s14  ;;  %p48_p0 = scmp.ne.s32.totalorder %s1556_s14, %s1552_s13 }
   0x9   : > { %p49_p1 = scmp.eq.s32.totalorder %s1568_s17, 0  ;;  %p54_p2 = scmp.ne.s32.totalorder %s1552_s13, %s1548_s12 }
   0xa   : > { %p1638_p3 = scmp.eq.s32.totalorder %s1303_s18, 0  ;;  %p120_p4 = scmp.eq.s32.totalorder %s1303_s18, 1 }
   0xb   : > { %p1642_p5 = por %p49_p1, %p48_p0  ;;  %p126_p6 = scmp.eq.s32.totalorder %s1304_s19, 1 }
   0xc   : > { %s1997_s21 = scalar_select %p1638_p3, 1, 0 }
   0xd   : > { %p1648_p7 = por %p1638_p3, %p54_p2  ;;  %p1652_p8 = por %p120_p4, %p48_p0 }
   0xe   : > { %p1656_p9 = por %p126_p6, %p54_p2  ;;  %p1305_p10 = scmp.ge.s32.totalorder %s1568_s17, 1 }
   0xf   : > { %s1999_s23 = scalar_select %p1648_p7, 1, 0 }
  0x10   : > { %s2000_s24 = scalar_select %p1652_p8, 1, 0 }
  0x11   : > { %s2001_s25 = scalar_select %p1656_p9, 1, 0 }
  0x12   : > { %p133_p11 = scmp.lt.s32.totalorder %s1568_s17, 3  ;;  %s1570_s27 = smov [#allocation7]  }
  0x13   : > { %s146_s28 = sshll.u32 %s1570_s27, 4  ;;  %p1359_p1 = scmp.lt.s32.totalorder %s1568_s17, 2  ;;  %s147_s28 = int_to_ptr.vmem [resolvable:$true] %s146_s28 }
  0x14   : > { %p1663_p13 = pnand %p1305_p10, %p133_p11  ;;  %s32_s4 = sadd.s32 1, %s1564_s16 }
  0x15   : > { %p1672_p4 = pnand %p1359_p1, %p1642_p5  ;;  %p1683_p6 = scmp.ge.s32.totalorder %s32_s4, 2 }
  0x16   : > { %s2002_s26 = scalar_select %p1663_p13, 1, 0 }
  0x17   : > { %p1346_p0 = pneg %p1663_p13  ;;  %s160_s6 = sand.u32 1, %s1556_s14  }
  0x18   : > { %s2003_s29 = scalar_select %p1672_p4, 1, 0 }
  0x19   : > { %p1678_p2 = pnand %p1346_p0, %p1638_p3  ;;  %s1424_s9 = scalar_lea.hbm %s1988_s1, 64 }
  0x1a   : > { %s2005_s5 = scalar_select %p1683_p6, 1, 0 }
  0x1b   : > { %p1425_p5 = scmp.ne.s32.totalorder %s1988_s1, %s1424_s9  ;;  %p1426_p10 = pneg %p1678_p2 }
  0x1c   : > { %p1431_p0 = scmp.lt.u32.totalorder %s1424_s9, %s1988_s1 }
  0x1d   : > { %p1427_p11 = pnand %p1426_p10, %p1425_p5 }
  0x1f   : > { %p1428_p1 = pneg %p1427_p11 }
  0x21   : > { %p1433_p12 = pnand %p1431_p0, %p1428_p1 }
  0x23   : > { %1436 = shalt.err (!%p1433_p12)
}
  0x24   : > { %s1437_s22 = scalar_lea.vmem %s147_s28, 64  ;;  %p1445_p7 = scmp.lt.s32.totalorder %s147_s28, %s147_s28 }
  0x25   : > { %p1438_p9 = scmp.ne.s32.totalorder %s147_s28, %s1437_s22  ;;  %p1446_p13 = scmp.lt.s32.totalorder %s1437_s22, %s1437_s22 }
  0x27   : > { %p1440_p8 = pnand %p1438_p9, %p1426_p10  ;;  %p1447_p4 = por %p1446_p13, %p1445_p7 }
  0x29   : > { %p1441_p3 = pneg %p1440_p8 }
  0x2b   : > { %p1448_p6 = pnand %p1447_p4, %p1441_p3 }
  0x2d   : > { %1451 = shalt.err (!%p1448_p6)
}
  0x2e   : > { %1349 = dma.hbm_to_vmem [thread:$0]  (!%p1678_p2), %s1988_s1, 64, %s147_s28, [#allocation8]  }
  0x2f   : > { %p2006_p9 = scmp.ne.s32.totalorder %s2005_s5, 0  ;;  %s1308_s8 = sshll.u32 %s160_s6, 6 }
  0x30   : > { %s1323_s10 = sshll.u32 %s1564_s16, 10  ;;  %s164_s19 = scalar_lea.vmem [#allocation4], %s1308_s8 }
  0x31   : > { %s2020_s4 = smov (%p2006_p9, %s32_s4), 0  ;;  %s1714_s18 = scalar_lea.hbm %s1987_s0, %s1323_s10 }
  0x32   : > { %s36_s9 = ssub.s32 %s1564_s16, %s2020_s4  ;;  %s173_s22 = sshll.u32 %s164_s19, 4  ;;  %s1721_s22 = int_to_ptr.vmem [resolvable:$true] %s173_s22 }
  0x33   : > { %p39_p3 = scmp.eq.s32.totalorder %s36_s9, 0  ;;  %s1723_s5 = scalar_lea.sflag [#allocation5], %s160_s6 }
  0x34   : > { %s1452_s27 = scalar_lea.hbm %s1714_s18, 1024  ;;  %p2007_p8 = scmp.ne.s32.totalorder %s2003_s29, 0 }
  0x35   : > { %s1719_s28 = scalar_select %p39_p3, %s1556_s14, %s41_s20  }
  0x36   : > { %p1453_p7 = scmp.ne.s32.totalorder %s1714_s18, %s1452_s27  ;;  %p1454_p12 = pneg %p2007_p8 }
  0x37   : > { %s1457_s8 = scalar_lea.hbm %s1987_s0, 2048  ;;  %p1458_p2 = scmp.lt.u32.totalorder %s1714_s18, %s1987_s0 }
  0x38   : > { %p1455_p13 = pnand %p1454_p12, %p1453_p7  ;;  %p1459_p6 = scmp.lt.u32.totalorder %s1457_s8, %s1452_s27 }
  0x39   : > { %p1461_p10 = scmp.lt.u32.totalorder %s1452_s27, %s1714_s18 }
  0x3a   : > { %p1456_p4 = pneg %p1455_p13  ;;  %p1460_p5 = por %p1459_p6, %p1458_p2 }
  0x3c   : > { %p1462_p11 = por %p1461_p10, %p1460_p5 }
  0x3e   : > { %p1463_p1 = pnand %p1462_p11, %p1456_p4 }
  0x40   : > { %1466 = shalt.err (!%p1463_p1)
}
  0x41   : > { %s1467_s20 = scalar_lea.vmem %s1721_s22, 1024  ;;  %s1571_s6 = smov [#allocation4]  }
  0x42   : > { %p1468_p0 = scmp.ne.s32.totalorder %s1721_s22, %s1467_s20  ;;  %s1472_s11 = sshll.u32 %s1571_s6, 4  ;;  %s1473_s11 = int_to_ptr.vmem [resolvable:$false] %s1472_s11 }
  0x43   : > { %s1474_s19 = scalar_lea.vmem %s1473_s11, 2048  ;;  %p1475_p7 = scmp.lt.s32.totalorder %s1721_s22, %s1473_s11 }
  0x44   : > { %p1470_p9 = pnand %p1468_p0, %p1454_p12  ;;  %p1476_p13 = scmp.lt.s32.totalorder %s1474_s19, %s1467_s20 }
  0x46   : > { %p1471_p3 = pneg %p1470_p9  ;;  %p1477_p2 = por %p1476_p13, %p1475_p7 }
  0x48   : > { %p1478_p6 = pnand %p1477_p2, %p1471_p3 }
  0x4a   : > { %1481 = shalt.err (!%p1478_p6)
}
  0x4b   : > { %s1572_s27 = smov 256   ;;  %s1573_s7 = smov 16  }
  0x4c   : > { %1353 = dma.hbm_to_vmem [thread:$0]  (!%p2007_p8), %s1714_s18, 1024, %s1721_s22, %s1723_s5, %s1572_s27, %s1572_s27, %s1573_s7  }
  0x4d   : > { %p2008_p12 = scmp.ne.s32.totalorder %s2002_s26, 0 }
  0x4e   : > { %s1754_s9 = sand.u32 (!%p2008_p12), 1, %s1552_s13   ;;  %p2009_p4 = scmp.ne.s32.totalorder (!%p2008_p12), %s1999_s23, 0 }
  0x4f   : > { %185 = sbr.rel (%p2008_p12) target bundleno = 900 (0x384), region = 32  ;;  %s1312_s8 = sshll.u32 (!%p2008_p12), %s1754_s9, 6 }
  0x50   : > { %s188_s10 = scalar_lea.sflag (!%p2008_p12), [#allocation5], %s1754_s9  ;;  %s191_s30 = scalar_lea.vmem (!%p2008_p12), [#allocation4], %s1312_s8 }
  0x56   : > { %1535 = dma.done.wait (%p2009_p4), %s188_s10, 1024  }
  0x57   : > { %1537 = vsyncadd (%p2009_p4), %s188_s10, 4294966272  ;;  %p2010_p5 = scmp.ne.s32.totalorder %s1997_s21, 0 }
  0x59   : > { %1539 = dma.done.wait (%p2010_p5), [#allocation8], 64  }
  0x5a   : > { %1541 = vsyncadd (%p2010_p5), [#allocation8], 4294967232  ;;  %v225_v0 = vld [vmem:[%s191_s30] sm:$0xff]  ;;  %v226_v1 = vld [vmem:[%s191_s30 + $0x8] sm:$0xff]  ;;  %v1574_v16 = vmov 0   ;;  %v250_v17 = vlaneseq  ;;  %vm222_vm0 = vcmask 253952  }
  0x5b   : > { %v227_v2 = vld [vmem:[%s191_s30 + $0x10] sm:$0xff]  ;;  %v234_v3 = vadd.f32 %v226_v1, %v225_v0  ;;  %v228_v4 = vld [vmem:[%s191_s30 + $0x18] sm:$0xff]  ;;  %v229_v5 = vld [vmem:[%s191_s30 + $0x20] sm:$0xff]  ;;  %v632_v12 = vmax.f32 %v225_v0, %v226_v1  ;;  %1418 = vset.pattern.permute.xlu0 %v1574_v16  ;;  %1419 = vset.pattern.permute.xlu1 %v1574_v16  ;;  %v1575_v18 = vmov 1966171168   ;;  %vm1036_vm1 = vcmask 261120  }
  0x5c   : > { %v230_v6 = vld [vmem:[%s191_s30 + $0x28] sm:$0xff]  ;;  %v231_v8 = vld [vmem:[%s191_s30 + $0x30] sm:$0xff]  ;;  %v232_v9 = vld [vmem:[%s191_s30 + $0x38] sm:$0xff]  ;;  %v237_v10 = vadd.f32 %v228_v4, %v227_v2  ;;  %v635_v13 = vmax.f32 %v227_v2, %v228_v4  ;;  %v383_v19 = vunpack.c.l.s4 %v1575_v18  ;;  %v1767_v20 = vshrl.u32 %v250_v17, 7  ;;  %s1320_s26 = sshll.u32 %s1560_s15, 4  ;;  %s216_s29 = scalar_lea.vmem [#allocation9], %s1754_s9 }
  0x5d   : > { %v240_v7 = vadd.f32 %v230_v6, %v229_v5  ;;  %235 = vadd.xlane.f32.xlu0 %v234_v3  ;;  %v243_v11 = vadd.f32 %v232_v9, %v231_v8  ;;  %v638_v14 = vmax.f32 %v229_v5, %v230_v6  ;;  %v641_v15 = vmax.f32 %v231_v8, %v232_v9  ;;  %s1216_s18 = sshll.u32 %s216_s29, 4  ;;  %s1937_s20 = scalar_lea.hbm %s1990_s3, %s1320_s26  ;;  %s1939_s18 = int_to_ptr.vmem [resolvable:$true] %s1216_s18 }
  0x5e   : > { %v384_v21 = vunpack.c.0.s8 %v383_v19  ;;  %v1770_v22 = vsub.s32 0, %v1767_v20  ;;  %v1773_v23 = vsub.s32 1, %v1767_v20  ;;  %v1776_v24 = vsub.s32 2, %v1767_v20  ;;  %s1204_s6 = scalar_lea.sflag [#allocation6], %s1754_s9  ;;  %s1482_s11 = scalar_lea.vmem %s1939_s18, 16 }
  0x5f   : > { %241 = vadd.xlane.f32.xlu1 %v240_v7  ;;  %v1779_v25 = vsub.s32 3, %v1767_v20  ;;  %v1782_v26 = vsub.s32 4, %v1767_v20  ;;  %v1785_v27 = vsub.s32 5, %v1767_v20  ;;  %v1788_v28 = vsub.s32 6, %v1767_v20  ;;  %p1483_p8 = scmp.ne.s32.totalorder %s1939_s18, %s1482_s11  ;;  %p2011_p10 = scmp.ne.s32.totalorder %s2000_s24, 0 }
  0x60   : > { %v1791_v29 = vsub.s32 7, %v1767_v20  ;;  %v1794_v31 = vsub.s32 %v384_v21, %v1767_v20  ;;  %vm1578_vm2 = vmmov 0   ;;  %vm597_vm3 = vcmask 130112   ;;  %s1579_s15 = smov [#allocation9]  }
  0x61   : > { %238 = vadd.xlane.f32.xlu0 %v237_v10  ;;  %vm604_vm4 = vcmask 195712   ;;  %vm611_vm5 = vcmask 261312   ;;  %vm1032_vm6 = vcmask 1040384   ;;  %vm1122_vm7 = vcmask 1043456   ;;  %p1484_p11 = pnand %p1483_p8, %p2011_p10  ;;  %s1486_s19 = sshll.u32 %s1579_s15, 4  ;;  %s1487_s19 = int_to_ptr.vmem [resolvable:$false] %s1486_s19 }
  0x62   : > { %vm1118_vm8 = vcmask 31744   ;;  %s1488_s27 = scalar_lea.vmem %s1487_s19, 32  ;;  %p1489_p0 = scmp.lt.s32.totalorder %s1939_s18, %s1487_s19 }
  0x63   : > { %244 = vadd.xlane.f32.xlu1 %v243_v11  ;;  %p1485_p1 = pneg %p1484_p11  ;;  %p1490_p9 = scmp.lt.s32.totalorder %s1488_s27, %s1482_s11 }
  0x65   : > { %633 = vmax.xlane.f32.xlu0 %v632_v12  ;;  %p1491_p3 = por %p1490_p9, %p1489_p0 }
  0x67   : > { %636 = vmax.xlane.f32.xlu1 %v635_v13  ;;  %p1492_p7 = pnand %p1491_p3, %p1485_p1 }
  0x69   : > { %639 = vmax.xlane.f32.xlu0 %v638_v14 }
  0x6b   : > { %642 = vmax.xlane.f32.xlu1 %v641_v15 }
  0xea   : > { %v236_v30 = vpop.xlane.xlu0 %235 }
  0xeb   : > { %v253_v33 = vrot.slane %v236_v30, %v1770_v22  ;;  %v257_v34 = vrot.slane %v236_v30, %v1773_v23  ;;  %v261_v35 = vrot.slane %v236_v30, %v1776_v24  ;;  %v265_v36 = vrot.slane %v236_v30, %v1779_v25 }
  0xec   : > { %v242_v32 = vpop.xlane.xlu1 %241  ;;  %v269_v37 = vrot.slane %v236_v30, %v1782_v26  ;;  %v273_v38 = vrot.slane %v236_v30, %v1785_v27  ;;  %v277_v39 = vrot.slane %v236_v30, %v1788_v28  ;;  %v281_v40 = vrot.slane %v236_v30, %v1791_v29 }
  0xed   : > { %v378_v41 = vcombine.low %v253_v33, %v257_v34  ;;  %v379_v42 = vcombine.low %v261_v35, %v265_v36  ;;  %v317_v43 = vrot.slane %v242_v32, %v1770_v22  ;;  %v321_v44 = vrot.slane %v242_v32, %v1773_v23 }
  0xee   : > { %v239_v45 = vpop.xlane.xlu0 %238  ;;  %v380_v46 = vcombine.low %v269_v37, %v273_v38  ;;  %v381_v47 = vcombine.low %v277_v39, %v281_v40  ;;  %v325_v48 = vrot.slane %v242_v32, %v1776_v24  ;;  %v329_v49 = vrot.slane %v242_v32, %v1779_v25 }
  0xef   : > { %v388_v50 = vrot.slane %v378_v41, %v1794_v31  ;;  %v395_v51 = vrot.slane %v379_v42, %v1794_v31  ;;  %v285_v52 = vrot.slane %v239_v45, %v1770_v22  ;;  %v289_v53 = vrot.slane %v239_v45, %v1773_v23 }
  0xf0   : > { %v402_v54 = vrot.slane %v380_v46, %v1794_v31  ;;  %v409_v55 = vrot.slane %v381_v47, %v1794_v31  ;;  %v293_v56 = vrot.slane %v239_v45, %v1776_v24  ;;  %v297_v57 = vrot.slane %v239_v45, %v1779_v25  ;;  %v245_v6 = vpop.xlane.xlu1 %244 }
  0xf1   : > { %v410_v58 = vcombine.low %v388_v50, %v395_v51  ;;  %v301_v59 = vrot.slane %v239_v45, %v1782_v26  ;;  %v305_v60 = vrot.slane %v239_v45, %v1785_v27  ;;  %v309_v61 = vrot.slane %v239_v45, %v1788_v28 }
  0xf2   : > { %v411_v62 = vcombine.low %v402_v54, %v409_v55  ;;  %v313_v63 = vrot.slane %v239_v45, %v1791_v29  ;;  %v427_v0 = vcombine.low %v285_v52, %v289_v53  ;;  %v428_v1 = vcombine.low %v293_v56, %v297_v57  ;;  %v634_v42 = vpop.xlane.xlu0 %633 }
  0xf3   : > { %v418_v2 = vrot.slane %v410_v58, %v1794_v31  ;;  %v429_v3 = vcombine.low %v301_v59, %v305_v60  ;;  %v333_v4 = vrot.slane %v242_v32, %v1782_v26  ;;  %v337_v5 = vrot.slane %v242_v32, %v1785_v27 }
  0xf4   : > { %v425_v7 = vrot.slane %v411_v62, %v1794_v31  ;;  %v430_v8 = vcombine.low %v309_v61, %v313_v63  ;;  %v437_v9 = vrot.slane %v427_v0, %v1794_v31  ;;  %v444_v10 = vrot.slane %v428_v1, %v1794_v31  ;;  %v637_v59 = vpop.xlane.xlu1 %636 }
  0xf5   : > { %v451_v11 = vrot.slane %v429_v3, %v1794_v31  ;;  %v341_v12 = vrot.slane %v242_v32, %v1788_v28  ;;  %v345_v13 = vrot.slane %v242_v32, %v1791_v29  ;;  %v476_v14 = vcombine.low %v317_v43, %v321_v44 }
  0xf6   : > { %v426_v15 = vcombine.low %v418_v2, %v425_v7  ;;  %v458_v16 = vrot.slane %v430_v8, %v1794_v31  ;;  %v459_v18 = vcombine.low %v437_v9, %v444_v10  ;;  %v477_v19 = vcombine.low %v325_v48, %v329_v49 }
  0xf7   : > { %v478_v21 = vcombine.low %v333_v4, %v337_v5  ;;  %v479_v30 = vcombine.low %v341_v12, %v345_v13  ;;  %v486_v33 = vrot.slane %v476_v14, %v1794_v31  ;;  %v349_v34 = vrot.slane %v245_v6, %v1770_v22 }
  0xf8   : > { %575 = vperm.xlu0 %1418, %v426_v15   ;;  %v460_v35 = vcombine.low %v451_v11, %v458_v16  ;;  %v467_v36 = vrot.slane %v459_v18, %v1794_v31  ;;  %v493_v37 = vrot.slane %v477_v19, %v1794_v31  ;;  %v353_v32 = vrot.slane %v245_v6, %v1773_v23 }
  0xf9   : > { %v500_v38 = vrot.slane %v478_v21, %v1794_v31  ;;  %v507_v39 = vrot.slane %v479_v30, %v1794_v31  ;;  %v357_v40 = vrot.slane %v245_v6, %v1776_v24  ;;  %v361_v41 = vrot.slane %v245_v6, %v1779_v25  ;;  %v640_v30 = vpop.xlane.xlu0 %639 }
  0xfa   : > { %v474_v43 = vrot.slane %v460_v35, %v1794_v31  ;;  %v508_v44 = vcombine.low %v486_v33, %v493_v37  ;;  %v365_v45 = vrot.slane %v245_v6, %v1782_v26  ;;  %v369_v46 = vrot.slane %v245_v6, %v1785_v27 }
  0xfb   : > { %v509_v47 = vcombine.low %v500_v38, %v507_v39  ;;  %v373_v48 = vrot.slane %v245_v6, %v1788_v28  ;;  %v377_v49 = vrot.slane %v245_v6, %v1791_v29  ;;  %v525_v50 = vcombine.low %v349_v34, %v353_v32 }
  0xfc   : > { %v475_v51 = vcombine.low %v467_v36, %v474_v43  ;;  %v516_v52 = vrot.slane %v508_v44, %v1794_v31  ;;  %v526_v53 = vcombine.low %v357_v40, %v361_v41  ;;  %v527_v54 = vcombine.low %v365_v45, %v369_v46 }
  0xfd   : > { %v523_v55 = vrot.slane %v509_v47, %v1794_v31  ;;  %v528_v56 = vcombine.low %v373_v48, %v377_v49  ;;  %v535_v57 = vrot.slane %v525_v50, %v1794_v31  ;;  %v651_v58 = vrot.slane %v634_v42, %v1770_v22 }
  0xfe   : > { %578 = vperm.xlu1 %1419, %v475_v51   ;;  %v542_v60 = vrot.slane %v526_v53, %v1794_v31  ;;  %v549_v61 = vrot.slane %v527_v54, %v1794_v31  ;;  %v655_v62 = vrot.slane %v634_v42, %v1773_v23  ;;  %v659_v63 = vrot.slane %v634_v42, %v1776_v24 }
  0xff   : > { %v524_v0 = vcombine.low %v516_v52, %v523_v55  ;;  %v556_v1 = vrot.slane %v528_v56, %v1794_v31  ;;  %v663_v2 = vrot.slane %v634_v42, %v1779_v25  ;;  %v667_v3 = vrot.slane %v634_v42, %v1782_v26  ;;  %v643_v52 = vpop.xlane.xlu1 %642 }
 0x100   : > { %v557_v4 = vcombine.low %v535_v57, %v542_v60  ;;  %v671_v5 = vrot.slane %v634_v42, %v1785_v27  ;;  %v675_v6 = vrot.slane %v634_v42, %v1788_v28  ;;  %v679_v7 = vrot.slane %v634_v42, %v1791_v29 }
 0x101   : > { %v558_v8 = vcombine.low %v549_v61, %v556_v1  ;;  %v776_v9 = vcombine.low %v651_v58, %v655_v62  ;;  %v777_v10 = vcombine.low %v659_v63, %v663_v2  ;;  %v683_v11 = vrot.slane %v637_v59, %v1770_v22 }
 0x102   : > { %581 = vperm.xlu1 %1419, %v524_v0   ;;  %v565_v12 = vrot.slane %v557_v4, %v1794_v31  ;;  %v778_v13 = vcombine.low %v667_v3, %v671_v5  ;;  %v779_v14 = vcombine.low %v675_v6, %v679_v7  ;;  %v687_v15 = vrot.slane %v637_v59, %v1773_v23 }
 0x103   : > { %v572_v16 = vrot.slane %v558_v8, %v1794_v31  ;;  %v786_v18 = vrot.slane %v776_v9, %v1794_v31  ;;  %v793_v19 = vrot.slane %v777_v10, %v1794_v31  ;;  %v691_v21 = vrot.slane %v637_v59, %v1776_v24 }
 0x104   : > { %v800_v33 = vrot.slane %v778_v13, %v1794_v31  ;;  %v807_v34 = vrot.slane %v779_v14, %v1794_v31  ;;  %v695_v35 = vrot.slane %v637_v59, %v1779_v25  ;;  %v699_v36 = vrot.slane %v637_v59, %v1782_v26 }
 0x105   : > { %v573_v37 = vcombine.low %v565_v12, %v572_v16  ;;  %v808_v32 = vcombine.low %v786_v18, %v793_v19  ;;  %v703_v38 = vrot.slane %v637_v59, %v1785_v27  ;;  %v707_v39 = vrot.slane %v637_v59, %v1788_v28 }
 0x106   : > { %v809_v40 = vcombine.low %v800_v33, %v807_v34  ;;  %v711_v41 = vrot.slane %v637_v59, %v1791_v29  ;;  %v825_v42 = vcombine.low %v683_v11, %v687_v15  ;;  %v826_v43 = vcombine.low %v691_v21, %v695_v35 }
 0x107   : > { %584 = vperm.xlu1 %1419, %v573_v37   ;;  %v816_v44 = vrot.slane %v808_v32, %v1794_v31  ;;  %v827_v45 = vcombine.low %v699_v36, %v703_v38  ;;  %v715_v46 = vrot.slane %v640_v30, %v1770_v22  ;;  %v719_v47 = vrot.slane %v640_v30, %v1773_v23 }
 0x108   : > { %v823_v48 = vrot.slane %v809_v40, %v1794_v31  ;;  %v828_v49 = vcombine.low %v707_v39, %v711_v41  ;;  %v835_v50 = vrot.slane %v825_v42, %v1794_v31  ;;  %v842_v51 = vrot.slane %v826_v43, %v1794_v31  ;;  %v1034_v42 = vld [vmem:[#allocation7] sm:$0xf] }
 0x109   : > { %v849_v53 = vrot.slane %v827_v45, %v1794_v31  ;;  %v723_v54 = vrot.slane %v640_v30, %v1776_v24  ;;  %v727_v55 = vrot.slane %v640_v30, %v1779_v25  ;;  %v731_v56 = vrot.slane %v640_v30, %v1782_v26 }
 0x10a   : > { %v824_v57 = vcombine.low %v816_v44, %v823_v48  ;;  %v856_v58 = vrot.slane %v828_v49, %v1794_v31  ;;  %v857_v59 = vcombine.low %v835_v50, %v842_v51  ;;  %v735_v60 = vrot.slane %v640_v30, %v1785_v27 }
 0x10b   : > { %v739_v61 = vrot.slane %v640_v30, %v1788_v28  ;;  %v743_v62 = vrot.slane %v640_v30, %v1791_v29  ;;  %v874_v63 = vcombine.low %v715_v46, %v719_v47  ;;  %v875_v0 = vcombine.low %v723_v54, %v727_v55 }
 0x10c   : > { %973 = vperm.xlu1 %1419, %v824_v57   ;;  %v858_v1 = vcombine.low %v849_v53, %v856_v58  ;;  %v865_v2 = vrot.slane %v857_v59, %v1794_v31  ;;  %v876_v3 = vcombine.low %v731_v56, %v735_v60  ;;  %v747_v4 = vrot.slane %v643_v52, %v1770_v22 }
 0x10d   : > { %v877_v5 = vcombine.low %v739_v61, %v743_v62  ;;  %v884_v6 = vrot.slane %v874_v63, %v1794_v31  ;;  %v891_v7 = vrot.slane %v875_v0, %v1794_v31  ;;  %v751_v8 = vrot.slane %v643_v52, %v1773_v23 }
 0x10e   : > { %v872_v9 = vrot.slane %v858_v1, %v1794_v31  ;;  %v898_v10 = vrot.slane %v876_v3, %v1794_v31  ;;  %v755_v11 = vrot.slane %v643_v52, %v1776_v24  ;;  %v759_v12 = vrot.slane %v643_v52, %v1779_v25 }
 0x10f   : > { %v905_v13 = vrot.slane %v877_v5, %v1794_v31  ;;  %v906_v14 = vcombine.low %v884_v6, %v891_v7  ;;  %v763_v22 = vrot.slane %v643_v52, %v1782_v26  ;;  %v767_v15 = vrot.slane %v643_v52, %v1785_v27 }
 0x110   : > { %v873_v16 = vcombine.low %v865_v2, %v872_v9  ;;  %v771_v18 = vrot.slane %v643_v52, %v1788_v28  ;;  %v775_v23 = vrot.slane %v643_v52, %v1791_v29  ;;  %v923_v19 = vcombine.low %v747_v4, %v751_v8 }
 0x111   : > { %v907_v21 = vcombine.low %v898_v10, %v905_v13  ;;  %v914_v30 = vrot.slane %v906_v14, %v1794_v31  ;;  %v924_v33 = vcombine.low %v755_v11, %v759_v12  ;;  %v925_v24 = vcombine.low %v763_v22, %v767_v15 }
 0x112   : > { %976 = vperm.xlu1 %1419, %v873_v16   ;;  %v926_v25 = vcombine.low %v771_v18, %v775_v23  ;;  %v933_v34 = vrot.slane %v923_v19, %v1794_v31  ;;  %v1576_v38 = vmov 0.0   ;;  %v1577_v41 = vmov -inf   ;;  %v1035_v23 = vld [vmem:[%s1989_s2] sm:$0xf] }
 0x113   : > { %v921_v35 = vrot.slane %v907_v21, %v1794_v31  ;;  %v940_v26 = vrot.slane %v924_v33, %v1794_v31  ;;  %v947_v27 = vrot.slane %v925_v24, %v1794_v31  ;;  %223 = vst.msk [vmem:[#allocation2] sm:$0x1] %vm222_vm0, %v1576_v38  ;;  %1328 = vmatprep.subr.mxu0 %v1576_v38  ;;  %224 = vst.msk [vmem:[#allocation3] sm:$0x1] %vm222_vm0, %v1577_v41 }
 0x114   : > { %v954_v28 = vrot.slane %v926_v25, %v1794_v31  ;;  %1333 = vmatprep.subr.mxu1 %v1576_v38  ;;  %1329 = vmatpush3.xpose.msk.msra.mxu0 %vm1036_vm1, %v1034_v42  ;;  %v587_v43 = vand.u32 127, %v250_v17 }
 0x115   : > { %v922_v36 = vcombine.low %v914_v30, %v921_v35  ;;  %v955_v29 = vcombine.low %v933_v34, %v940_v26  ;;  %1330 = vmatprep.mubr.msk.f32.mxu0 %vm1578_vm2, %v1576_v38  ;;  %1335 = vmatprep.mubr.msk.f32.mxu1 %vm1578_vm2, %v1576_v38 }
 0x116   : > { %v956_v37 = vcombine.low %v947_v27, %v954_v28  ;;  %v592_v44 = vadd.s32 4294967288, %v587_v43  ;;  %v599_v45 = vadd.s32 4294967280, %v587_v43  ;;  %v606_v48 = vadd.s32 4294967272, %v587_v43  ;;  %1334 = vmatpush3.msk.msra.mxu1 %vm1122_vm7, %v1035_v23 }
 0x117   : > { %979 = vperm.xlu1 %1419, %v922_v36   ;;  %v963_v32 = vrot.slane %v955_v29, %v1794_v31  ;;  %v590_v50 = vsub.s32 %v587_v43, %v1767_v20 }
 0x118   : > { %v970_v39 = vrot.slane %v956_v37, %v1794_v31  ;;  %v595_v47 = vsub.s32 %v592_v44, %v1767_v20  ;;  %v602_v49 = vsub.s32 %v599_v45, %v1767_v20  ;;  %v609_v54 = vsub.s32 %v606_v48, %v1767_v20 }
 0x11a   : > { %v971_v40 = vcombine.low %v963_v32, %v970_v39  ;;  %v233_v63 = vld [vmem:[#allocation2] sm:$0x1]  ;;  %v631_v12 = vld [vmem:[#allocation3] sm:$0x1] }
 0x11c   : > { %982 = vperm.xlu1 %1419, %v971_v40  }
 0x177   : > { %v576_v52 = vpop.permute.xlu0 %575 }
 0x178   : > { %v591_v56 = vrot.slane %v576_v52, %v590_v50 }
 0x17d   : > { %v579_v46 = vpop.permute.xlu1 %578 }
 0x17e   : > { %v596_v53 = vrot.slane %v579_v46, %v595_v47 }
 0x180   : > { %v598_v57 = vsel %vm597_vm3, %v596_v53, %v591_v56 }
 0x181   : > { %v582_v51 = vpop.permute.xlu1 %581 }
 0x182   : > { %v603_v55 = vrot.slane %v582_v51, %v602_v49 }
 0x184   : > { %v605_v59 = vsel %vm604_vm4, %v603_v55, %v598_v57 }
 0x186   : > { %v585_v17 = vpop.permute.xlu1 %584 }
 0x187   : > { %v610_v58 = vrot.slane %v585_v17, %v609_v54 }
 0x189   : > { %v612_v60 = vsel %vm611_vm5, %v610_v58, %v605_v59 }
 0x18a   : > { %v619_v61 = vrot.slane %v612_v60, %v1794_v31 }
 0x18b   : > { %v974_v62 = vpop.permute.xlu1 %973 }
 0x18c   : > { %v626_v0 = vrot.slane %v619_v61, %v1794_v31  ;;  %v987_v5 = vrot.slane %v974_v62, %v590_v50 }
 0x18e   : > { %v628_v20 = vadd.f32 %v626_v0, %v233_v63 }
 0x190   : > { %630 = vst.msk [vmem:[#allocation2] sm:$0x1] %vm222_vm0, %v628_v20 }
 0x191   : > { %v977_v1 = vpop.permute.xlu1 %976 }
 0x192   : > { %v991_v3 = vrot.slane %v977_v1, %v595_v47 }
 0x194   : > { %v992_v7 = vsel %vm597_vm3, %v991_v3, %v987_v5 }
 0x196   : > { %v980_v2 = vpop.permute.xlu1 %979 }
 0x197   : > { %v996_v4 = vrot.slane %v980_v2, %v602_v49  ;;  %v1023_v22 = vld [vmem:[#allocation2] sm:$0x1] }
 0x198   : > { %v1024_v15 = vmul.f32 0.00390625, %v1023_v22 }
 0x199   : > { %v997_v9 = vsel %vm604_vm4, %v996_v4, %v992_v7 }
 0x19b   : > { %v983_v6 = vpop.permute.xlu1 %982 }
 0x19c   : > { %v1001_v8 = vrot.slane %v983_v6, %v609_v54 }
 0x19e   : > { %v1002_v10 = vsel %vm611_vm5, %v1001_v8, %v997_v9 }
 0x19f   : > { %v1009_v11 = vrot.slane %v1002_v10, %v1794_v31 }
 0x1a1   : > { %v1016_v13 = vrot.slane %v1009_v11, %v1794_v31 }
 0x1a3   : > { %v1018_v14 = vmax.f32 %v631_v12, %v1016_v13 }
 0x1a5   : > { %1019 = vst.msk [vmem:[#allocation3] sm:$0x1] %vm222_vm0, %v1018_v14 }
 0x1ac   : > { %v1314_v16 = vld [vmem:[#allocation3] ss:$0 sm:$0xff] }
 0x1ad   : > { %v1033_v18 = vsel %vm1032_vm6, %v1024_v15, %v1314_v16 }
 0x1ae   : > { %1331 = vmatmul.mubr.msk.f32.vlgmr.msra.gmra.mrb[0].mxu0 %vm1036_vm1, %v1033_v18 }
 0x281   : > { %v1109_v19 = vpop.f32.mrb[0].mxu0 }
 0x282   : > { %v1113_v31 = vmax.f32 %v1109_v19, 0.0  ;;  %v1332_v21 = vpop.f32.mrb[1].mxu0 }
 0x284   : > { %v1115_v30 = vrot.slane %v1113_v31, 1 }
 0x286   : > { %v1117_v33 = vadd.f32 %v1115_v30, %v1113_v31 }
 0x288   : > { %1336 = vmatmul.mubr.msk.f32.vlgmr.msra.gmra.mrb[0].mxu1 %vm1118_vm8, %v1117_v33 }
 0x35b   : > { %v1192_v24 = vpop.f32.mrb[0].mxu1 }
 0x35c   : > { %v1319_v25 = vmul.f32 -1.442695, %v1192_v24  ;;  %v1337_v34 = vpop.f32.mrb[1].mxu1 }
 0x35e   : > { %1420 = vpow2.f32 %v1319_v25 }
 0x368   : > { %v1421_v35 = vpop.eup %1420 }
 0x369   : > { %v1199_v26 = vadd.f32 1.0, %v1421_v35 }
 0x36b   : > { %1422 = vrcp.f32 %v1199_v26 }
 0x375   : > { %v1423_v27 = vpop.eup %1422 }
 0x376   : > { %1202 = vst.msk [vmem:[%s216_s29] sm:$0x1] %vm222_vm0, %v1423_v27 }
 0x377   : > { %1495 = shalt.err (!%p1492_p7)
}
 0x378   : > { %s1496_s7 = scalar_lea.hbm %s1937_s20, 16  ;;  %s1500_s10 = scalar_lea.hbm %s1990_s3, 32 }
 0x379   : > { %p1497_p13 = scmp.ne.s32.totalorder %s1937_s20, %s1496_s7  ;;  %p1501_p12 = scmp.lt.u32.totalorder %s1937_s20, %s1990_s3 }
 0x37a   : > { %p1502_p4 = scmp.lt.u32.totalorder %s1500_s10, %s1496_s7  ;;  %p1504_p8 = scmp.lt.u32.totalorder %s1496_s7, %s1937_s20 }
 0x37b   : > { %p1498_p2 = pnand %p1497_p13, %p2011_p10 }
 0x37c   : > { %p1503_p5 = por %p1502_p4, %p1501_p12 }
 0x37d   : > { %p1499_p6 = pneg %p1498_p2 }
 0x37e   : > { %p1505_p11 = por %p1504_p8, %p1503_p5 }
 0x380   : > { %p1506_p1 = pnand %p1505_p11, %p1499_p6 }
 0x382   : > { %1509 = shalt.err (!%p1506_p1)
}
 0x383   : > { %1344 = dma.vmem_to_hbm [thread:$0]  (%p2011_p10), %s1939_s18, 16, %s1937_s20, %s1204_s6  }
 0x384 PF: > { %s1228_s23 = sand.u32 1, %s1548_s12   ;;  %p2012_p0 = scmp.ne.s32.totalorder %s2001_s25, 0 }
 0x385   : > { %p2013_p9 = scmp.ge.s32.totalorder %s1568_s17, 2  ;;  %s1229_s26 = scalar_lea.sflag [#allocation6], %s1228_s23 }
 0x387   : > { %p1355_p3 = pnand %p2013_p9, %p2012_p0 }
 0x389   : > { %1543 = dma.done.wait (!%p1355_p3), %s1229_s26, 16  }
 0x38a   : > { %1545 = vsyncadd (!%p1355_p3), %s1229_s26, 4294967280  ;;  %s20_s17 = sadd.s32 1, %s1568_s17   ;;  %s2014_s12 = smov %s1552_s13 }
 0x38b   : > { %p17_p7 = scmp.ge.s32.totalorder %s20_s17, 4   ;;  %s2015_s13 = smov %s1556_s14 }
 0x38c   : > { %s2016_s14 = smov %s1719_s28  ;;  %s2017_s15 = smov %s1564_s16 }
 0x38d   : > { %s2018_s16 = smov %s2020_s4  ;;  %19 = sbr.rel (!%p17_p7) target bundleno = 7 (0x7), region = 89 }
 0x394   :  { %1233 = vsyncpa [#allocation5], 1 }
 0x395   :  { %1235 = vsyncpa [#allocation5 + $0x1], 1 }
 0x396   :  { %1236 = vsyncpa [#allocation8], 1 }
 0x397   :  { %1237 = vsyncpa [#allocation6], 1 }
 0x398   :  { %1239 = vsyncpa [#allocation6 + $0x1], 1 }

</bundles_post_ra>
